<compile_context>
chip_gen: v5e
topology: v5e:2x2
jax: 0.10.0
libtpu: 0.0.40
codegen_flags: <defaults>
</compile_context>

<pallas_src>
import jax
import jax.numpy as jnp
from jax.experimental import pallas as pl
from jax.experimental.pallas import tpu as pltpu

LANE = 128
SUBLANE = 8
_VMEM_TILE_BUDGET = 20 * 1024 * 1024   # v7x-safe (64 MiB phys / 32 MiB default scoped per TC)
_VMEM_LIMIT_BYTES = 28 * 1024 * 1024   # explicit scoped-VMEM limit matching the budget
_PALLAS_MIN_ROWS = 128                 # below this a standalone pallas_call is pure overhead


def qfunc_kernel(obs_ref, w_ref, b_ref, q_ref):
    # feature_fn == identity; Linear layer on the MXU with f32 accumulation.
    q = jnp.dot(obs_ref[...], w_ref[...], preferred_element_type=jnp.float32)  # [TB, A]
    q_ref[...] = (q + b_ref[...]).astype(q_ref.dtype)


def _round_up(x, m):
    return -(-x // m) * m


def _pick_tile_b(B, D, A, obs_itemsize, w_itemsize):
    """Batch tile size: budget the lane-padded, double-buffered obs/out tiles plus
    the VMEM-resident W/bias against a v7x-safe 20 MiB, and guarantee >=2 grid
    steps for mid-size batches so both v7x TensorCores get work."""
    D_l = _round_up(D, LANE)
    A_l = _round_up(A, LANE)
    per_row = 2 * D_l * obs_itemsize + 2 * A_l * 4                     # 2x-buffered obs in + f32 out
    resident = 2 * (_round_up(D, SUBLANE) * A_l * w_itemsize + A_l * 4)  # W + bias (counted 2x, safe)
    avail = _VMEM_TILE_BUDGET - resident
    # TODO(synk): if `avail` goes non-positive (huge D*A), tile the D axis instead.
    avail = max(avail, per_row * LANE)
    cap = min(max((avail // per_row) // LANE * LANE, LANE), 4096)
    if B > cap:
        return cap
    if B >= 512:
        # ensure >=2 grid steps so dimension_semantics=("parallel",) can shard
        # across both v7x TensorCores (one harmless extra step on v5e/v6e).
        return _round_up(-(-B // 2), SUBLANE)
    return _round_up(B, SUBLANE)


def q_function_forward(observation, weight, bias, action, *, force_pallas=False):
    """AbstractQFunction with identity features + Linear(obs_dim, act_dim) head.
    Returns (q_state [B, A] == forward_state, q_selected [B] == forward).

    bf16 inputs: cast observation/weight to bf16 once at load time upstream
    (no per-call cast here); accumulation and outputs stay f32."""
    B, D = observation.shape
    A = weight.shape[1]

    if not force_pallas and B < _PALLAS_MIN_ROWS:
        # Tiny RL batches: let XLA fuse the linear head with its neighbours
        # instead of paying pallas_call launch + DMA overhead.
        q_state = (observation @ weight + bias).astype(jnp.float32)
    else:
        obs_isz = jnp.dtype(observation.dtype).itemsize
        w_isz = jnp.dtype(weight.dtype).itemsize
        tile_b = _pick_tile_b(B, D, A, obs_isz, w_isz)
        grid = (pl.cdiv(B, tile_b),)   # last block may be partial (masked DMA); no obs padding

        q_state = pl.pallas_call(
            qfunc_kernel,
            grid=grid,
            in_specs=[
                pl.BlockSpec((tile_b, D), lambda i: (i, 0)),   # obs tile, pipelined over batch
                pl.BlockSpec((D, A), lambda i: (0, 0)),        # W stays VMEM-resident
                pl.BlockSpec((1, A), lambda i: (0, 0)),        # bias stays VMEM-resident
            ],
            # Output last dim == full A: writeback is only the useful payload
            # (masked vst beats 16x-inflated lane-padded HBM traffic at A << 128),
            # and no [:B, :A] slice copy is needed afterwards.
            out_specs=pl.BlockSpec((tile_b, A), lambda i: (i, 0)),
            out_shape=jax.ShapeDtypeStruct((B, A), jnp.float32),
            compiler_params=pltpu.CompilerParams(
                dimension_semantics=("parallel",),             # megacore sharding on v7x
                vmem_limit_bytes=_VMEM_LIMIT_BYTES,
            ),
        )(observation, weight, bias.reshape(1, A))

    # gather(-1, action.unsqueeze(-1)).squeeze(-1) — tiny, fused by XLA.
    # NOTE: assumes 0 <= action < act_dim (torch.gather raises; take_along_axis clamps).
    q_sel = jnp.take_along_axis(q_state, action.astype(jnp.int32)[:, None], axis=-1)[:, 0]
    return q_state, q_sel


if __name__ == "__main__":
    OBS_DIM, ACT_DIM = 32, 8

    key = jax.random.PRNGKey(0)
    k_obs, k_w, k_b, k_a = jax.random.split(key, 4)

    # Deterministic synthetic "checkpoint" for the linear model head.
    weight = jax.random.normal(k_w, (OBS_DIM, ACT_DIM), dtype=jnp.float32) * 0.1
    bias = jax.random.normal(k_b, (ACT_DIM,), dtype=jnp.float32) * 0.1

    # B=64: aligned single tile.  B=50: exercises the ragged (partial) batch block.
    for B in (64, 50):
        ko, ka = jax.random.split(jax.random.fold_in(k_obs, B))
        observation = jax.random.normal(ko, (B, OBS_DIM), dtype=jnp.float32)
        action = jax.random.randint(ka, (B,), 0, ACT_DIM, dtype=jnp.int32)

        q_state, q_sel = q_function_forward(observation, weight, bias, action,
                                            force_pallas=True)
        q_state = jax.block_until_ready(q_state)
        q_sel = jax.block_until_ready(q_sel)

        # Pure-JAX reference (identity features -> linear -> gather(-1) -> squeeze(-1))
        ref_state = observation @ weight + bias
        ref_sel = jnp.take_along_axis(ref_state, action[:, None], axis=-1)[:, 0]

        assert q_state.shape == (B, ACT_DIM)
        assert q_sel.shape == (B,)
        assert jnp.allclose(q_state, ref_state, atol=1e-5, rtol=1e-5)
        assert jnp.allclose(q_sel, ref_sel, atol=1e-5, rtol=1e-5)

    # Tiny-batch dispatch path (pure XLA fallback, no pallas_call).
    obs_small = jax.random.normal(k_obs, (8, OBS_DIM), dtype=jnp.float32)
    act_small = jax.random.randint(k_a, (8,), 0, ACT_DIM, dtype=jnp.int32)
    qs_small, qsel_small = q_function_forward(obs_small, weight, bias, act_small)
    qs_small = jax.block_until_ready(qs_small)
    assert jnp.allclose(qs_small, obs_small @ weight + bias, atol=1e-5, rtol=1e-5)

    print("KERNEL_OK")
</pallas_src>

<mosaic_0001>
module attributes {stable_mosaic.version = 11 : i64} {
  func.func @qfunc_kernel(%arg0: i32, %arg1: memref<64x32xf32, #tpu.memory_space<vmem>>, %arg2: memref<32x8xf32, #tpu.memory_space<vmem>>, %arg3: memref<1x8xf32, #tpu.memory_space<vmem>>, %arg4: memref<64x8xf32, #tpu.memory_space<vmem>>) attributes {dimension_semantics = [#tpu.dimension_semantics<parallel>], iteration_bounds = array<i64: 1>, scalar_prefetch = 0 : i64, scratch_operands = 0 : i64, tpu.core_type = #tpu.core_type<tc>, window_params = [{transform_indices = @transform_0, window_bounds = array<i64: 64, 32>}, {pipeline_mode = #tpu.pipeline_mode<synchronous>, transform_indices = @transform_1, window_bounds = array<i64: 32, 8>}, {pipeline_mode = #tpu.pipeline_mode<synchronous>, transform_indices = @transform_2, window_bounds = array<i64: 1, 8>}, {transform_indices = @transform_3, window_bounds = array<i64: 64, 8>}]} {
    %c0 = arith.constant 0 : index
    %c0_0 = arith.constant 0 : index
    %0 = vector.load %arg1[%c0, %c0_0] : memref<64x32xf32, #tpu.memory_space<vmem>>, vector<64x32xf32>
    %c0_1 = arith.constant 0 : index
    %c0_2 = arith.constant 0 : index
    %1 = vector.load %arg2[%c0_1, %c0_2] : memref<32x8xf32, #tpu.memory_space<vmem>>, vector<32x8xf32>
    %cst = arith.constant dense<0.000000e+00> : vector<64x8xf32>
    %2 = tpu.matmul %0, %1, %cst {dimension_numbers = #tpu.dot_dimension_numbers<[1], [0], [0], [1], [0, 0, 1, 1], [], []>} : vector<64x32xf32>, vector<32x8xf32>, vector<64x8xf32> -> vector<64x8xf32>
    %c0_3 = arith.constant 0 : index
    %c0_4 = arith.constant 0 : index
    %3 = vector.load %arg3[%c0_3, %c0_4] : memref<1x8xf32, #tpu.memory_space<vmem>>, vector<1x8xf32>
    %4 = vector.broadcast %3 : vector<1x8xf32> to vector<64x8xf32>
    %5 = arith.addf %2, %4 : vector<64x8xf32>
    %c0_5 = arith.constant 0 : index
    %c0_6 = arith.constant 0 : index
    %6 = vector.load %arg4[%c0_5, %c0_6] : memref<64x8xf32, #tpu.memory_space<vmem>>, vector<64x8xf32>
    tpu.vector_store %arg4[%c0_5, %c0_6], %5 {strides = array<i32>} : memref<64x8xf32, #tpu.memory_space<vmem>>, vector<64x8xf32>,
    return
  }
  func.func @transform_0(%arg0: i32) -> (i32, i32) {
    %c0_i32 = arith.constant 0 : i32
    %c0_i32_0 = arith.constant 0 : i32
    return %arg0, %c0_i32 : i32, i32
  }
  func.func @transform_1(%arg0: i32) -> (i32, i32) {
    %c0_i32 = arith.constant 0 : i32
    %c0_i32_0 = arith.constant 0 : i32
    %c0_i32_1 = arith.constant 0 : i32
    return %c0_i32, %c0_i32_0 : i32, i32
  }
  func.func @transform_2(%arg0: i32) -> (i32, i32) {
    %c0_i32 = arith.constant 0 : i32
    %c0_i32_0 = arith.constant 0 : i32
    %c0_i32_1 = arith.constant 0 : i32
    return %c0_i32, %c0_i32_0 : i32, i32
  }
  func.func @transform_3(%arg0: i32) -> (i32, i32) {
    %c0_i32 = arith.constant 0 : i32
    %c0_i32_0 = arith.constant 0 : i32
    return %arg0, %c0_i32 : i32, i32
  }
}

</mosaic_0001>

<bundles_post_ra>
// kernel: tpu_custom_call.1
= control target key start
LH: loop header
LB: loop body
LE: loop exit
PB: predicated region body
PF: predicated region fallthrough
CT: control target
= control target key end

     0   :  { %vm30_vm0 = vcmask 261120   ;;  %vm96_vm1 = vcmask 64512   ;;  %s229_s1 = inlined_call_operand.vmem [shape: f32[32,8], index: 1, kind: input, shape index: {}]   ;;  %s230_s0 = inlined_call_operand.vmem [shape: f32[64,32], index: 0, kind: input, shape index: {}]   ;;  %s231_s2 = inlined_call_operand.vmem [shape: f32[1,8], index: 2, kind: input, shape index: {}]   ;;  %s232_s3 = inlined_call_operand.vmem [shape: f32[64,8], index: 3, kind: output, shape index: {}]  }
   0x1   :  { %v25_v0 = vld [vmem:[%s229_s1 + $0x18] sm:$0xff]  ;;  %v24_v1 = vld [vmem:[%s229_s1 + $0x10] sm:$0xff]  ;;  %v23_v2 = vld [vmem:[%s229_s1 + $0x8] sm:$0xff] }
   0x2   :  { %118 = vmatpush.msra.mxu2 %v25_v0  ;;  %119 = vmatpush.msra.mxu3 %v25_v0  ;;  %v22_v3 = vld [vmem:[%s229_s1] sm:$0xff]  ;;  %v20_v5 = vld [vmem:[%s230_s0 + $0x30] sm:$0xff]  ;;  %v19_v8 = vld [vmem:[%s230_s0 + $0x28] sm:$0xff] }
   0x3   :  { %67 = vmatpush.msra.mxu0 %v25_v0  ;;  %117 = vmatpush.msra.mxu1 %v25_v0  ;;  %v18_v4 = vld [vmem:[%s230_s0 + $0x20] sm:$0xff]  ;;  %v16_v7 = vld [vmem:[%s230_s0 + $0x10] sm:$0xff]  ;;  %v21_v9 = vld [vmem:[%s230_s0 + $0x38] sm:$0xff] }
   0x4   :  { %121 = vmatpush.msra.mxu2 %v24_v1  ;;  %122 = vmatpush.msra.mxu3 %v24_v1  ;;  %v14_v6 = vld [vmem:[%s230_s0] sm:$0xff]  ;;  %v15_v10 = vld [vmem:[%s230_s0 + $0x8] sm:$0xff]  ;;  %v17_v11 = vld [vmem:[%s230_s0 + $0x18] sm:$0xff] }
   0x5   :  { %68 = vmatpush.msra.mxu0 %v24_v1  ;;  %120 = vmatpush.msra.mxu1 %v24_v1  ;;  %v129_v12 = vld [vmem:[%s231_s2] ss:$0 sm:$0xff] }
   0x6   :  { %124 = vmatpush.msra.mxu2 %v23_v2  ;;  %125 = vmatpush.msra.mxu3 %v23_v2 }
   0x7   :  { %69 = vmatpush.msra.mxu0 %v23_v2  ;;  %123 = vmatpush.msra.mxu1 %v23_v2 }
   0x8   :  { %127 = vmatpush.msra.mxu2 %v22_v3  ;;  %128 = vmatpush.msra.mxu3 %v22_v3 }
   0x9   :  { %113 = vmatmul.msk.f32.vlgmr.msra.gmra.mxu2 %vm30_vm0, %v18_v4  ;;  %115 = vmatmul.msk.f32.vlgmr.msra.gmra.mxu3 %vm30_vm0, %v20_v5 }
   0xa   :  { %70 = vmatpush.msra.mxu0 %v22_v3  ;;  %126 = vmatpush.msra.mxu1 %v22_v3 }
   0xb   :  { %109 = vmatmul.msk.f32.vlgmr.msra.gmra.mxu0 %vm30_vm0, %v14_v6  ;;  %111 = vmatmul.msk.f32.vlgmr.msra.gmra.mxu1 %vm30_vm0, %v16_v7 }
  0x11   :  { %114 = vmatmul.msk.f32.gmra.mxu2 %vm30_vm0, %v19_v8  ;;  %116 = vmatmul.msk.f32.gmra.mxu3 %vm30_vm0, %v21_v9 }
  0x13   :  { %110 = vmatmul.msk.f32.gmra.mxu0 %vm30_vm0, %v15_v10  ;;  %112 = vmatmul.msk.f32.gmra.mxu1 %vm30_vm0, %v17_v11 }
  0x88   :  { %v72_v13 = vpop.f32.mrf.mxu0  ;;  %v78_v14 = vpop.f32.mrf.mxu1 }
  0x89   :  { %v73_v15 = vadd.f32 %v129_v12, %v72_v13  ;;  %v79_v16 = vadd.f32 %v129_v12, %v78_v14 }
  0x8b   :  { %97 = vst.msk [vmem:[%s232_s3] sm:$0xff] %vm96_vm1, %v73_v15 }
  0x8c   :  { %99 = vst.msk [vmem:[%s232_s3 + $0x10] sm:$0xff] %vm96_vm1, %v79_v16  ;;  %v84_v17 = vpop.f32.mrf.mxu2  ;;  %v90_v18 = vpop.f32.mrf.mxu3 }
  0x8d   :  { %v85_v19 = vadd.f32 %v129_v12, %v84_v17  ;;  %v91_v20 = vadd.f32 %v129_v12, %v90_v18 }
  0x8f   :  { %101 = vst.msk [vmem:[%s232_s3 + $0x20] sm:$0xff] %vm96_vm1, %v85_v19 }
  0x90   :  { %103 = vst.msk [vmem:[%s232_s3 + $0x30] sm:$0xff] %vm96_vm1, %v91_v20  ;;  %v75_v21 = vpop.f32.mrf.mxu0  ;;  %v81_v22 = vpop.f32.mrf.mxu1 }
  0x91   :  { %v76_v23 = vadd.f32 %v129_v12, %v75_v21  ;;  %v82_v24 = vadd.f32 %v129_v12, %v81_v22 }
  0x93   :  { %98 = vst.msk [vmem:[%s232_s3 + $0x8] sm:$0xff] %vm96_vm1, %v76_v23 }
  0x94   :  { %100 = vst.msk [vmem:[%s232_s3 + $0x18] sm:$0xff] %vm96_vm1, %v82_v24  ;;  %v87_v25 = vpop.f32.mrf.mxu2  ;;  %v93_v26 = vpop.f32.mrf.mxu3 }
  0x95   :  { %v88_v27 = vadd.f32 %v129_v12, %v87_v25  ;;  %v94_v28 = vadd.f32 %v129_v12, %v93_v26 }
  0x97   :  { %102 = vst.msk [vmem:[%s232_s3 + $0x28] sm:$0xff] %vm96_vm1, %v88_v27 }
  0x98   :  { %104 = vst.msk [vmem:[%s232_s3 + $0x38] sm:$0xff] %vm96_vm1, %v94_v28 }

</bundles_post_ra>
